<compile_context>
chip_gen: v7x
topology: tpu7x:2x2x1
jax: 0.10.0
libtpu: 0.0.40
codegen_flags: <defaults>
</compile_context>

<pallas_src>
import functools

import jax
import jax.numpy as jnp
from jax.experimental import pallas as pl
from jax.experimental.pallas import tpu as pltpu


def _shortcut_kernel(x_ref, s_ref, o_ref, *, b_tile, c_in, pad):
    # x_ref: (b_tile*C, H*W)          lane-dense input slab for b_tile images
    # s_ref: (H*W, H_out*W_out)       0/1 selection matrix (resident, fetched once)
    # o_ref: (b_tile*C_out, H_out*W_out)
    c_out = c_in + 2 * pad
    hw_o = o_ref.shape[-1]

    # One tall lane-selection matmul does the stride-2 H/W decimation and the
    # flatten to a lane-dense (H_out*W_out)-wide output row in a single MXU dot.
    sub = jnp.dot(x_ref[...], s_ref[...],
                  preferred_element_type=jnp.float32).astype(o_ref.dtype)

    # Hoisted zero slab for the channel padding (written only where needed).
    zeros_pad = jnp.zeros((pad, hw_o), o_ref.dtype) if pad > 0 else None

    # Static unroll over the (small) batch tile: zero only the pad rows, write the
    # subsampled middle channels exactly once.
    for i in range(b_tile):
        base = i * c_out
        if pad > 0:
            o_ref[base:base + pad, :] = zeros_pad
            o_ref[base + pad + c_in:base + c_out, :] = zeros_pad
        o_ref[base + pad:base + pad + c_in, :] = sub[i * c_in:(i + 1) * c_in, :]


def _pick_b_tile(B, C, C_out, bytes_per_b, target_bytes=1 << 20):
    """Largest divisor of B that keeps block rows sublane-aligned (or full-extent),
    stays under ~target_bytes of input per step, and (if possible) leaves >=2 grid
    steps so v7x can shard the batch axis across its two TensorCores."""
    def aligned(t):
        return t == B or ((t * C) % 8 == 0 and (t * C_out) % 8 == 0)

    cands = [t for t in range(1, B + 1) if B % t == 0 and aligned(t)]
    under = [t for t in cands if t * bytes_per_b <= target_bytes]
    multi = [t for t in under if B // t >= 2]
    if multi:
        return max(multi)
    if under:
        return max(under)
    return min(cands)


def lambda_layer_shortcut(x, planes):
    """Pallas equivalent of the ResNet option-A LambdaLayer shortcut."""
    B, C, H, W = x.shape
    assert H % 2 == 0 and W % 2 == 0
    pad = planes // 4
    C_out = C + 2 * pad
    H_out, W_out = H // 2, W // 2
    HW, HWo = H * W, H_out * W_out

    # Free row-major reshape: lane-dense input slab (B*C, H*W).
    x2 = x.reshape(B * C, HW)

    # 0/1 selection matrix: S[h*W + w, h'*W_out + w'] = 1 iff h = 2h', w = 2w'.
    # A single matmul with S performs both stride-2 decimations and flattens each
    # (H_out, W_out) plane into a lane-dense row of length H_out*W_out.
    src = (2 * jnp.arange(H_out)[:, None] * W + 2 * jnp.arange(W_out)[None, :]).reshape(-1)
    S = jnp.zeros((HW, HWo), x.dtype).at[src, jnp.arange(HWo)].set(1)

    bytes_per_b = C * HW * x.dtype.itemsize
    b_tile = _pick_b_tile(B, C, C_out, bytes_per_b)
    grid = (B // b_tile,)

    kernel = functools.partial(_shortcut_kernel, b_tile=b_tile, c_in=C, pad=pad)

    out2 = pl.pallas_call(
        kernel,
        out_shape=jax.ShapeDtypeStruct((B * C_out, HWo), x.dtype),
        grid=grid,
        in_specs=[
            pl.BlockSpec((b_tile * C, HW), lambda b: (b, 0)),
            pl.BlockSpec((HW, HWo), lambda b: (0, 0)),   # same block every step -> no re-DMA
        ],
        out_specs=pl.BlockSpec((b_tile * C_out, HWo), lambda b: (b, 0)),
        compiler_params=pltpu.CompilerParams(dimension_semantics=("parallel",)),
    )(x2, S)

    # Free row-major reshape back to NCHW.
    return out2.reshape(B, C_out, H_out, W_out)


if __name__ == "__main__":
    key = jax.random.PRNGKey(0)
    B, C, H, W = 2, 4, 16, 16
    planes = 8  # -> pad = 2, output channels = 8
    x = jax.random.normal(key, (B, C, H, W), dtype=jnp.float32)

    out = lambda_layer_shortcut(x, planes)
    out = jax.block_until_ready(out)

    # Pure-JAX reference of the PyTorch lambda semantics.
    pad = planes // 4
    ref = jnp.pad(x[:, :, ::2, ::2], ((0, 0), (pad, pad), (0, 0), (0, 0)))
    assert out.shape == (B, C + 2 * pad, H // 2, W // 2), out.shape
    assert out.dtype == x.dtype
    assert jnp.allclose(out, ref, atol=1e-6), "mismatch vs reference"

    print("KERNEL_OK")
</pallas_src>

<mosaic_0001>
module attributes {stable_mosaic.version = 11 : i64} {
  func.func @_shortcut_kernel(%arg0: i32, %arg1: memref<8x256xf32, #tpu.memory_space<vmem>>, %arg2: memref<256x64xf32, #tpu.memory_space<vmem>>, %arg3: memref<16x64xf32, #tpu.memory_space<vmem>>) attributes {dimension_semantics = [#tpu.dimension_semantics<parallel>], iteration_bounds = array<i64: 1>, scalar_prefetch = 0 : i64, scratch_operands = 0 : i64, tpu.core_type = #tpu.core_type<tc>, window_params = [{transform_indices = @transform_0, window_bounds = array<i64: 8, 256>}, {pipeline_mode = #tpu.pipeline_mode<synchronous>, transform_indices = @transform_1, window_bounds = array<i64: 256, 64>}, {transform_indices = @transform_2, window_bounds = array<i64: 16, 64>}]} {
    %c0 = arith.constant 0 : index
    %c0_0 = arith.constant 0 : index
    %0 = vector.load %arg1[%c0, %c0_0] : memref<8x256xf32, #tpu.memory_space<vmem>>, vector<8x256xf32>
    %c0_1 = arith.constant 0 : index
    %c0_2 = arith.constant 0 : index
    %1 = vector.load %arg2[%c0_1, %c0_2] : memref<256x64xf32, #tpu.memory_space<vmem>>, vector<256x64xf32>
    %cst = arith.constant dense<0.000000e+00> : vector<8x64xf32>
    %2 = tpu.matmul %0, %1, %cst {dimension_numbers = #tpu.dot_dimension_numbers<[1], [0], [0], [1], [0, 0, 1, 1], [], []>} : vector<8x256xf32>, vector<256x64xf32>, vector<8x64xf32> -> vector<8x64xf32>
    %cst_3 = arith.constant 0.000000e+00 : f32
    %3 = vector.broadcast %cst_3 : f32 to vector<2x64xf32>
    %c0_4 = arith.constant 0 : index
    %c0_5 = arith.constant 0 : index
    %4 = vector.load %arg3[%c0_4, %c0_5] : memref<16x64xf32, #tpu.memory_space<vmem>>, vector<2x64xf32>
    tpu.vector_store %arg3[%c0_4, %c0_5], %3 {strides = array<i32>} : memref<16x64xf32, #tpu.memory_space<vmem>>, vector<2x64xf32>,
    %c6 = arith.constant 6 : index
    %c0_6 = arith.constant 0 : index
    %5 = vector.load %arg3[%c6, %c0_6] : memref<16x64xf32, #tpu.memory_space<vmem>>, vector<2x64xf32>
    tpu.vector_store %arg3[%c6, %c0_6], %3 {strides = array<i32>} : memref<16x64xf32, #tpu.memory_space<vmem>>, vector<2x64xf32>,
    %6 = vector.extract_strided_slice %2 {offsets = [0, 0], sizes = [4, 64], strides = [1, 1]} : vector<8x64xf32> to vector<4x64xf32>
    %c2 = arith.constant 2 : index
    %c0_7 = arith.constant 0 : index
    %7 = vector.load %arg3[%c2, %c0_7] : memref<16x64xf32, #tpu.memory_space<vmem>>, vector<4x64xf32>
    tpu.vector_store %arg3[%c2, %c0_7], %6 {strides = array<i32>} : memref<16x64xf32, #tpu.memory_space<vmem>>, vector<4x64xf32>,
    %c8 = arith.constant 8 : index
    %c0_8 = arith.constant 0 : index
    %8 = vector.load %arg3[%c8, %c0_8] : memref<16x64xf32, #tpu.memory_space<vmem>>, vector<2x64xf32>
    tpu.vector_store %arg3[%c8, %c0_8], %3 {strides = array<i32>} : memref<16x64xf32, #tpu.memory_space<vmem>>, vector<2x64xf32>,
    %c14 = arith.constant 14 : index
    %c0_9 = arith.constant 0 : index
    %9 = vector.load %arg3[%c14, %c0_9] : memref<16x64xf32, #tpu.memory_space<vmem>>, vector<2x64xf32>
    tpu.vector_store %arg3[%c14, %c0_9], %3 {strides = array<i32>} : memref<16x64xf32, #tpu.memory_space<vmem>>, vector<2x64xf32>,
    %10 = vector.extract_strided_slice %2 {offsets = [4, 0], sizes = [4, 64], strides = [1, 1]} : vector<8x64xf32> to vector<4x64xf32>
    %c10 = arith.constant 10 : index
    %c0_10 = arith.constant 0 : index
    %11 = vector.load %arg3[%c10, %c0_10] : memref<16x64xf32, #tpu.memory_space<vmem>>, vector<4x64xf32>
    tpu.vector_store %arg3[%c10, %c0_10], %10 {strides = array<i32>} : memref<16x64xf32, #tpu.memory_space<vmem>>, vector<4x64xf32>,
    return
  }
  func.func @transform_0(%arg0: i32) -> (i32, i32) {
    %c0_i32 = arith.constant 0 : i32
    %c0_i32_0 = arith.constant 0 : i32
    return %arg0, %c0_i32 : i32, i32
  }
  func.func @transform_1(%arg0: i32) -> (i32, i32) {
    %c0_i32 = arith.constant 0 : i32
    %c0_i32_0 = arith.constant 0 : i32
    %c0_i32_1 = arith.constant 0 : i32
    return %c0_i32, %c0_i32_0 : i32, i32
  }
  func.func @transform_2(%arg0: i32) -> (i32, i32) {
    %c0_i32 = arith.constant 0 : i32
    %c0_i32_0 = arith.constant 0 : i32
    return %arg0, %c0_i32 : i32, i32
  }
}

</mosaic_0001>

<bundles_post_ra>
// kernel: tpu_custom_call.1
= control target key start
LH: loop header
LB: loop body
LE: loop exit
PB: predicated region body
PF: predicated region fallthrough
CT: control target
= control target key end

     0   :  { %s369_s0 = inlined_call_operand.vmem [shape: f32[8,256], index: 0, kind: input, shape index: {}]   ;;  %s370_s1 = inlined_call_operand.vmem [shape: f32[256,64], index: 1, kind: input, shape index: {}]   ;;  %s371_s2 = inlined_call_operand.hbm [shape: f32[16,64], index: 2, kind: output, shape index: {}]  }
   0x1   :  { %v30_v0 = vld [vmem:[%s370_s1 + $0x80] sm:$0xff]  ;;  %v31_v1 = vld [vmem:[%s370_s1 + $0x88] sm:$0xff]  ;;  %v32_v5 = vld [vmem:[%s370_s1 + $0x90] sm:$0xff] }
   0x2   :  { %v14_v2 = vld [vmem:[%s370_s1] sm:$0xff]  ;;  %v176_v3 = vpack.c.bf16 %v31_v1, %v30_v0  ;;  %v15_v4 = vld [vmem:[%s370_s1 + $0x8] sm:$0xff]  ;;  %v33_v6 = vld [vmem:[%s370_s1 + $0x98] sm:$0xff] }
   0x3   :  { %v178_v7 = vpack.c.bf16 %v15_v4, %v14_v2  ;;  %v180_v8 = vpack.c.bf16 %v33_v6, %v32_v5  ;;  %v16_v9 = vld [vmem:[%s370_s1 + $0x10] sm:$0xff]  ;;  %v17_v10 = vld [vmem:[%s370_s1 + $0x18] sm:$0xff]  ;;  %v34_v11 = vld [vmem:[%s370_s1 + $0xa0] sm:$0xff] }
   0x4   :  { %177 = vmatprep.subr.bf16.mxu0 %v176_v3  ;;  %v35_v12 = vld [vmem:[%s370_s1 + $0xa8] sm:$0xff]  ;;  %v182_v13 = vpack.c.bf16 %v17_v10, %v16_v9  ;;  %v18_v15 = vld [vmem:[%s370_s1 + $0x20] sm:$0xff]  ;;  %v36_v17 = vld [vmem:[%s370_s1 + $0xb0] sm:$0xff] }
   0x5   :  { %179 = vmatpush3.bf16.msra.mxu0 %v178_v7  ;;  %v184_v14 = vpack.c.bf16 %v35_v12, %v34_v11  ;;  %v19_v16 = vld [vmem:[%s370_s1 + $0x28] sm:$0xff]  ;;  %v37_v18 = vld [vmem:[%s370_s1 + $0xb8] sm:$0xff]  ;;  %v20_v21 = vld [vmem:[%s370_s1 + $0x30] sm:$0xff] }
   0x6   :  { %181 = vmatprep.subr.bf16.mxu0 %v180_v8  ;;  %v186_v19 = vpack.c.bf16 %v19_v16, %v18_v15  ;;  %v188_v20 = vpack.c.bf16 %v37_v18, %v36_v17  ;;  %v21_v22 = vld [vmem:[%s370_s1 + $0x38] sm:$0xff]  ;;  %v38_v23 = vld [vmem:[%s370_s1 + $0xc0] sm:$0xff]  ;;  %v39_v24 = vld [vmem:[%s370_s1 + $0xc8] sm:$0xff] }
   0x7   :  { %v13_v25 = vld [vmem:[%s369_s0 + $0x8] sm:$0xff] }
   0x8   :  { %110 = vmatprep.mubr.f32.mxu0 %v13_v25 }
   0x9   :  { %183 = vmatpush3.bf16.msra.mxu0 %v182_v13 }
   0xa   :  { %185 = vmatprep.subr.bf16.mxu0 %v184_v14 }
   0xb   :  { %7 = vsyncpa [#allocation3], 0  ;;  %v190_v26 = vpack.c.bf16 %v21_v22, %v20_v21  ;;  %v192_v27 = vpack.c.bf16 %v39_v24, %v38_v23  ;;  %v22_v28 = vld [vmem:[%s370_s1 + $0x40] sm:$0xff]  ;;  %v23_v29 = vld [vmem:[%s370_s1 + $0x48] sm:$0xff]  ;;  %vm116_vm0 = vcmask 517120   ;;  %v236_v50 = vmov 0.0  }
   0xc   :  { %v40_v30 = vld [vmem:[%s370_s1 + $0xd0] sm:$0xff]  ;;  %v41_v31 = vld [vmem:[%s370_s1 + $0xd8] sm:$0xff]  ;;  %v194_v32 = vpack.c.bf16 %v23_v29, %v22_v28  ;;  %v42_v36 = vld [vmem:[%s370_s1 + $0xe0] sm:$0xff]  ;;  %117 = vst.msk [vmem:[#allocation2] sm:$0x3] %vm116_vm0, %v236_v50  ;;  %s237_s21 = smov [#allocation2]  }
   0xd   :  { %187 = vmatpush3.bf16.msra.mxu0 %v186_v19  ;;  %v196_v33 = vpack.c.bf16 %v41_v31, %v40_v30  ;;  %v24_v34 = vld [vmem:[%s370_s1 + $0x50] sm:$0xff]  ;;  %v25_v35 = vld [vmem:[%s370_s1 + $0x58] sm:$0xff]  ;;  %v43_v37 = vld [vmem:[%s370_s1 + $0xe8] sm:$0xff]  ;;  %118 = vst.msk [vmem:[#allocation2 + $0x6] sm:$0x3] %vm116_vm0, %v236_v50  ;;  %s130_s22 = sshll.u32 %s237_s21, 4  ;;  %s131_s22 = int_to_ptr.vmem [resolvable:$true] %s130_s22 }
   0xe   :  { %189 = vmatprep.subr.bf16.mxu0 %v188_v20  ;;  %v198_v38 = vpack.c.bf16 %v25_v35, %v24_v34  ;;  %v200_v39 = vpack.c.bf16 %v43_v37, %v42_v36  ;;  %v26_v40 = vld [vmem:[%s370_s1 + $0x60] sm:$0xff]  ;;  %v27_v41 = vld [vmem:[%s370_s1 + $0x68] sm:$0xff]  ;;  %v44_v42 = vld [vmem:[%s370_s1 + $0xf0] sm:$0xff]  ;;  %121 = vst.msk [vmem:[#allocation2 + $0x8] sm:$0x3] %vm116_vm0, %v236_v50  ;;  %vm119_vm1 = vcmask 519168   ;;  %p217_p1 = scmp.lt.s32.totalorder %s131_s22, %s131_s22 }
   0xf   :  { %v45_v43 = vld [vmem:[%s370_s1 + $0xf8] sm:$0xff]  ;;  %v202_v44 = vpack.c.bf16 %v27_v41, %v26_v40  ;;  %v28_v46 = vld [vmem:[%s370_s1 + $0x70] sm:$0xff]  ;;  %v12_v49 = vld [vmem:[%s369_s0] sm:$0xff]  ;;  %122 = vst.msk [vmem:[#allocation2 + $0xe] sm:$0x3] %vm116_vm0, %v236_v50  ;;  %vm123_vm2 = vcmask 523268  }
  0x10   :  { %v204_v45 = vpack.c.bf16 %v45_v43, %v44_v42  ;;  %v29_v47 = vld [vmem:[%s370_s1 + $0x78] sm:$0xff]  ;;  %s212_s1 = scalar_lea.vmem %s131_s22, 256 }
  0x11   :  { %191 = vmatpush3.bf16.msra.mxu0 %v190_v26  ;;  %v206_v48 = vpack.c.bf16 %v29_v47, %v28_v46  ;;  %p213_p0 = scmp.ne.s32.totalorder %s131_s22, %s212_s1  ;;  %p218_p2 = scmp.lt.s32.totalorder %s212_s1, %s212_s1 }
  0x12   :  { %193 = vmatprep.subr.bf16.mxu0 %v192_v27 }
  0x13   :  { %p219_p3 = por %p218_p2, %p217_p1 }
  0x15   :  { %195 = vmatpush3.bf16.msra.mxu0 %v194_v32  ;;  %p220_p4 = pnand %p219_p3, %p213_p0 }
  0x16   :  { %197 = vmatprep.subr.bf16.mxu0 %v196_v33 }
  0x19   :  { %199 = vmatpush3.bf16.msra.mxu0 %v198_v38 }
  0x1a   :  { %201 = vmatprep.subr.bf16.mxu0 %v200_v39 }
  0x1d   :  { %203 = vmatpush3.bf16.msra.mxu0 %v202_v44 }
  0x1e   :  { %205 = vmatprep.subr.bf16.mxu0 %v204_v45 }
  0x21   :  { %207 = vmatpush3.bf16.msra.mxu0 %v206_v48 }
  0x24   :  { %111 = vmatmul.mubr.f32.vlgmr.msra.gmra.mrb[0].mxu0 %v12_v49 }
  0xf7   :  { %v173_v51 = vpop.f32.mrb[0].mxu0 }
  0xf8   :  { %v174_v52 = vpop.f32.mrb[1].mxu0 }
  0xf9   :  { %v175_v53 = vadd.f32 %v174_v52, %v173_v51 }
  0xfb   :  { %120 = vst.msk [vmem:[#allocation2 + $0x2] sm:$0xf] %vm119_vm1, %v175_v53 }
  0xfc   :  { %124 = vst.msk [vmem:[#allocation2 + $0x6] sm:$0xf0] %vm123_vm2, %v175_v53 }
  0xfd   :  { %223 = shalt.err (!%p220_p4)
}
  0xfe   :  { %s224_s24 = scalar_lea.hbm %s371_s2, 256 }
  0xff   :  { %p225_p5 = scmp.ne.s32.totalorder %s371_s2, %s224_s24  ;;  %p228_p6 = scmp.lt.u32.totalorder %s224_s24, %s371_s2 }
 0x101   :  { %p230_p7 = pnand %p228_p6, %p225_p5 }
 0x103   :  { %233 = shalt.err (!%p230_p7)
}
 0x104   :  { %s238_s29 = smov 128   ;;  %s239_s30 = smov 8  }
 0x105   :  { %136 = dma.vmem_to_hbm [thread:$0]  %s131_s22, 256, %s371_s2, [#allocation3], %s238_s29, %s238_s29, %s239_s30  }
 0x106   :  { %234 = dma.done.wait [#allocation3], 256  }
 0x107   :  { %235 = vsyncadd [#allocation3], 4294967040 }
 0x108   :  { %140 = vsyncpa [#allocation3], 1 }

</bundles_post_ra>
